<compile_context>
chip_gen: v7x
topology: tpu7x:2x2x1
jax: 0.10.0
libtpu: 0.0.40
codegen_flags: <defaults>
</compile_context>

<pallas_src>
import functools

import jax
import jax.numpy as jnp
from jax.experimental import pallas as pl
from jax.experimental.pallas import tpu as pltpu

_LANES = 1024          # lane-dense minor dim (multiple of 128 -> unmasked vst)
_MAX_TILE_ROWS = 256   # 256 x 1024 x 4B = 1 MiB per f32 input block


def _vfl_kernel(pred_ref, gt_ref, label_ref, out_ref, *, alpha, gamma):
    s = pl.program_id(1)

    @pl.when(s == 0)
    def _():
        out_ref[...] = jnp.zeros_like(out_ref)

    # All math in float32 (the torch code disables autocast / calls .float()).
    x = pred_ref[...].astype(jnp.float32)      # logits
    y = gt_ref[...].astype(jnp.float32)        # gt scores
    lbl = label_ref[...].astype(jnp.float32)   # labels (0/1)

    # softplus(-|x|) = log(1 + exp(-|x|)) — computed once, reused twice.
    sp = jnp.log1p(jnp.exp(-jnp.abs(x)))
    # Numerically stable BCE with logits: max(x, 0) - x*y + log(1 + exp(-|x|))
    bce = jnp.maximum(x, 0.0) - x * y + sp
    # log(sigmoid(x)) = min(x, 0) - softplus(-|x|)  (stable for large |x|)
    pow_sig = jnp.exp(gamma * (jnp.minimum(x, 0.0) - sp))   # sigmoid(x) ** gamma
    weight = alpha * pow_sig * (1.0 - lbl) + y * lbl

    prod = bce * weight                                     # (tile_rows, LANES)
    tr, lanes = prod.shape
    # Sublane-friendly partial reduction: pure cross-vreg VPU adds into the
    # resident lane-dense output accumulator.
    out_ref[0] += prod.reshape(tr // 8, 8, lanes).sum(axis=0)


def _round_up(v, m):
    return ((v + m - 1) // m) * m


def varifocal_loss_pallas(pred_score, gt_score, label, alpha=0.75, gamma=2.0):
    """pred_score, gt_score, label: (B, N, C) arrays. Returns scalar f32 loss."""
    B, N, C = pred_score.shape
    total = B * N * C

    rows = _round_up(pl.cdiv(total, _LANES), 8)
    if rows <= 2 * _MAX_TILE_ROWS:
        num_parts = 1                        # too little work to split cores
        tile_rows = min(rows, _MAX_TILE_ROWS)
        rows = _round_up(rows, tile_rows)
    else:
        num_parts = 2                        # per-TC partial sums (v7x megacore)
        tile_rows = _MAX_TILE_ROWS
        rows = _round_up(rows, num_parts * tile_rows)
    steps = rows // (num_parts * tile_rows)
    padded_total = rows * _LANES
    pad_amt = padded_total - total

    def _flat(x, pad_val):
        xf = jnp.reshape(x, (-1,))
        if pad_amt:
            xf = jnp.pad(xf, (0, pad_amt), constant_values=pad_val)
        return xf.reshape(rows, _LANES)

    # Padding with (pred=0, gt=0, label=1) gives weight == 0 exactly, so padded
    # elements contribute 0 to the sum — no in-kernel masking needed.
    p2 = _flat(pred_score, 0)
    g2 = _flat(gt_score, 0)
    l2 = _flat(label, 1)

    in_map = lambda p, s: (p * steps + s, 0)
    in_spec = pl.BlockSpec((tile_rows, _LANES), in_map)

    bytes_per_elem = (p2.dtype.itemsize + g2.dtype.itemsize + l2.dtype.itemsize)
    cost = pl.CostEstimate(
        flops=14 * padded_total,
        transcendentals=3 * padded_total,
        bytes_accessed=padded_total * bytes_per_elem + num_parts * 8 * _LANES * 4,
    )

    kernel = functools.partial(_vfl_kernel, alpha=float(alpha), gamma=float(gamma))
    partials = pl.pallas_call(
        kernel,
        out_shape=jax.ShapeDtypeStruct((num_parts, 8, _LANES), jnp.float32),
        grid_spec=pltpu.PrefetchScalarGridSpec(
            num_scalar_prefetch=0,
            grid=(num_parts, steps),
            in_specs=[in_spec, in_spec, in_spec],
            out_specs=pl.BlockSpec((1, 8, _LANES), lambda p, s: (p, 0, 0)),
        ),
        compiler_params=pltpu.CompilerParams(
            dimension_semantics=("parallel", "arbitrary"),
        ),
        cost_estimate=cost,
    )(p2, g2, l2)

    # Tiny final reduction (num_parts * 8 * 1024 floats) + the mean(1).sum() scale.
    return jnp.sum(partials) / jnp.float32(N)


def varifocal_loss_ref(pred_score, gt_score, label, alpha=0.75, gamma=2.0):
    """Pure-JAX reference mirroring the PyTorch forward."""
    x = pred_score.astype(jnp.float32)
    y = gt_score.astype(jnp.float32)
    lbl = label.astype(jnp.float32)
    weight = alpha * (jax.nn.sigmoid(x) ** gamma) * (1.0 - lbl) + y * lbl
    bce = jnp.maximum(x, 0.0) - x * y + jnp.log1p(jnp.exp(-jnp.abs(x)))
    return (bce * weight).mean(1).sum()


if __name__ == "__main__":
    # Small shapes: batch=2, anchors=8, classes=4.
    B, N, C = 2, 8, 4
    key = jax.random.PRNGKey(0)
    k1, k2, k3 = jax.random.split(key, 3)

    pred_score = jax.random.normal(k1, (B, N, C), dtype=jnp.float32) * 2.0
    gt_score = jax.random.uniform(k2, (B, N, C), dtype=jnp.float32)
    label = jax.random.bernoulli(k3, p=0.3, shape=(B, N, C)).astype(jnp.float32)

    loss = jax.block_until_ready(varifocal_loss_pallas(pred_score, gt_score, label))
    ref = jax.block_until_ready(varifocal_loss_ref(pred_score, gt_score, label))

    assert jnp.allclose(loss, ref, rtol=1e-4, atol=1e-5), (loss, ref)
    print("KERNEL_OK")
</pallas_src>

<mosaic_0001>
module attributes {stable_mosaic.version = 11 : i64} {
  func.func @_vfl_kernel(%arg0: i32, %arg1: i32, %arg2: memref<8x1024xf32, #tpu.memory_space<vmem>>, %arg3: memref<8x1024xf32, #tpu.memory_space<vmem>>, %arg4: memref<8x1024xf32, #tpu.memory_space<vmem>>, %arg5: memref<1x8x1024xf32, #tpu.memory_space<vmem>>) attributes {dimension_semantics = [#tpu.dimension_semantics<parallel>, #tpu.dimension_semantics<arbitrary>], iteration_bounds = array<i64: 1, 1>, scalar_prefetch = 0 : i64, scratch_operands = 0 : i64, tpu.core_type = #tpu.core_type<tc>, window_params = [{transform_indices = @transform_0, window_bounds = array<i64: 8, 1024>}, {transform_indices = @transform_1, window_bounds = array<i64: 8, 1024>}, {transform_indices = @transform_2, window_bounds = array<i64: 8, 1024>}, {transform_indices = @transform_3, window_bounds = array<i64: 1, 8, 1024>}]} {
    %c0_i32 = arith.constant 0 : i32
    %0 = arith.cmpi eq, %arg1, %c0_i32 : i32
    %1 = arith.extui %0 : i1 to i32
    %c0_i32_0 = arith.constant 0 : i32
    %2 = arith.cmpi ne, %1, %c0_i32_0 : i32
    scf.if %2 {
      %cst_18 = arith.constant 0.000000e+00 : f32
      %38 = vector.broadcast %cst_18 : f32 to vector<1x8x1024xf32>
      %c0_19 = arith.constant 0 : index
      %c0_20 = arith.constant 0 : index
      %c0_21 = arith.constant 0 : index
      %39 = vector.load %arg5[%c0_19, %c0_20, %c0_21] : memref<1x8x1024xf32, #tpu.memory_space<vmem>>, vector<1x8x1024xf32>
      tpu.vector_store %arg5[%c0_19, %c0_20, %c0_21], %38 {strides = array<i32>} : memref<1x8x1024xf32, #tpu.memory_space<vmem>>, vector<1x8x1024xf32>,
    } else {
    }
    %c0 = arith.constant 0 : index
    %c0_1 = arith.constant 0 : index
    %3 = vector.load %arg2[%c0, %c0_1] : memref<8x1024xf32, #tpu.memory_space<vmem>>, vector<8x1024xf32>
    %c0_2 = arith.constant 0 : index
    %c0_3 = arith.constant 0 : index
    %4 = vector.load %arg3[%c0_2, %c0_3] : memref<8x1024xf32, #tpu.memory_space<vmem>>, vector<8x1024xf32>
    %c0_4 = arith.constant 0 : index
    %c0_5 = arith.constant 0 : index
    %5 = vector.load %arg4[%c0_4, %c0_5] : memref<8x1024xf32, #tpu.memory_space<vmem>>, vector<8x1024xf32>
    %6 = math.absf %3 : vector<8x1024xf32>
    %cst = arith.constant 0.000000e+00 : f32
    %7 = vector.broadcast %cst : f32 to vector<8x1024xf32>
    %8 = arith.subf %7, %6 : vector<8x1024xf32>
    %9 = math.exp %8 : vector<8x1024xf32>
    %10 = math.log1p %9 : vector<8x1024xf32>
    %cst_6 = arith.constant 0.000000e+00 : f32
    %11 = vector.broadcast %cst_6 : f32 to vector<8x1024xf32>
    %12 = arith.maximumf %3, %11 : vector<8x1024xf32>
    %13 = arith.mulf %3, %4 : vector<8x1024xf32>
    %14 = arith.subf %12, %13 : vector<8x1024xf32>
    %15 = arith.addf %14, %10 : vector<8x1024xf32>
    %cst_7 = arith.constant 0.000000e+00 : f32
    %16 = vector.broadcast %cst_7 : f32 to vector<8x1024xf32>
    %17 = arith.minimumf %3, %16 : vector<8x1024xf32>
    %18 = arith.subf %17, %10 : vector<8x1024xf32>
    %cst_8 = arith.constant 2.000000e+00 : f32
    %19 = vector.broadcast %cst_8 : f32 to vector<8x1024xf32>
    %20 = arith.mulf %19, %18 : vector<8x1024xf32>
    %21 = math.exp %20 : vector<8x1024xf32>
    %cst_9 = arith.constant 7.500000e-01 : f32
    %22 = vector.broadcast %cst_9 : f32 to vector<8x1024xf32>
    %23 = arith.mulf %22, %21 : vector<8x1024xf32>
    %cst_10 = arith.constant 1.000000e+00 : f32
    %24 = vector.broadcast %cst_10 : f32 to vector<8x1024xf32>
    %25 = arith.subf %24, %5 : vector<8x1024xf32>
    %26 = arith.mulf %23, %25 : vector<8x1024xf32>
    %27 = arith.mulf %4, %5 : vector<8x1024xf32>
    %28 = arith.addf %26, %27 : vector<8x1024xf32>
    %29 = arith.mulf %15, %28 : vector<8x1024xf32>
    %c0_11 = arith.constant 0 : index
    %c0_12 = arith.constant 0 : index
    %c0_13 = arith.constant 0 : index
    %30 = vector.load %arg5[%c0_11, %c0_12, %c0_13] : memref<1x8x1024xf32, #tpu.memory_space<vmem>>, vector<1x8x1024xf32>
    %31 = vector.shape_cast %30 : vector<1x8x1024xf32> to vector<8x1024xf32>
    %32 = vector.shape_cast %29 : vector<8x1024xf32> to vector<1x8x1024xf32>
    %cst_14 = arith.constant dense<0.000000e+00> : vector<8x1024xf32>
    %33 = vector.multi_reduction <add>, %32, %cst_14 [0] : vector<1x8x1024xf32> to vector<8x1024xf32>
    %34 = arith.addf %31, %33 : vector<8x1024xf32>
    %c0_15 = arith.constant 0 : index
    %c0_16 = arith.constant 0 : index
    %c0_17 = arith.constant 0 : index
    %35 = vector.load %arg5[%c0_15, %c0_16, %c0_17] : memref<1x8x1024xf32, #tpu.memory_space<vmem>>, vector<1x8x1024xf32>
    %36 = vector.shape_cast %35 : vector<1x8x1024xf32> to vector<8x1024xf32>
    %37 = vector.shape_cast %34 : vector<8x1024xf32> to vector<1x8x1024xf32>
    tpu.vector_store %arg5[%c0_15, %c0_16, %c0_17], %37 {strides = array<i32>} : memref<1x8x1024xf32, #tpu.memory_space<vmem>>, vector<1x8x1024xf32>,
    return
  }
  func.func @transform_0(%arg0: i32, %arg1: i32) -> (i32, i32) {
    %c1_i32 = arith.constant 1 : i32
    %0 = arith.muli %arg0, %c1_i32 : i32
    %1 = arith.addi %0, %arg1 : i32
    %c0_i32 = arith.constant 0 : i32
    %c0_i32_0 = arith.constant 0 : i32
    return %1, %c0_i32 : i32, i32
  }
  func.func @transform_1(%arg0: i32, %arg1: i32) -> (i32, i32) {
    %c1_i32 = arith.constant 1 : i32
    %0 = arith.muli %arg0, %c1_i32 : i32
    %1 = arith.addi %0, %arg1 : i32
    %c0_i32 = arith.constant 0 : i32
    %c0_i32_0 = arith.constant 0 : i32
    return %1, %c0_i32 : i32, i32
  }
  func.func @transform_2(%arg0: i32, %arg1: i32) -> (i32, i32) {
    %c1_i32 = arith.constant 1 : i32
    %0 = arith.muli %arg0, %c1_i32 : i32
    %1 = arith.addi %0, %arg1 : i32
    %c0_i32 = arith.constant 0 : i32
    %c0_i32_0 = arith.constant 0 : i32
    return %1, %c0_i32 : i32, i32
  }
  func.func @transform_3(%arg0: i32, %arg1: i32) -> (i32, i32, i32) {
    %c0_i32 = arith.constant 0 : i32
    %c0_i32_0 = arith.constant 0 : i32
    %c0_i32_1 = arith.constant 0 : i32
    return %arg0, %c0_i32, %c0_i32_0 : i32, i32, i32
  }
}

</mosaic_0001>

<bundles_post_ra>
// kernel: tpu_custom_call.1
= control target key start
LH: loop header
LB: loop body
LE: loop exit
PB: predicated region body
PF: predicated region fallthrough
CT: control target
= control target key end

     0   :  { %8 = vsyncpa [#allocation3], 0  ;;  %s757_s0 = inlined_call_operand.hbm [shape: f32[8,1024], index: 0, kind: input, shape index: {}]   ;;  %s758_s1 = inlined_call_operand.hbm [shape: f32[8,1024], index: 1, kind: input, shape index: {}]   ;;  %s759_s2 = inlined_call_operand.hbm [shape: f32[8,1024], index: 2, kind: input, shape index: {}]   ;;  %s760_s3 = inlined_call_operand.hbm [shape: f32[1,8,1024], index: 3, kind: output, shape index: {}]  }
   0x1   :  { %9 = vsyncpa [#allocation6], 0 }
   0x2   :  { %10 = vsyncpa [#allocation4], 0  ;;  %s520_s12 = smov [#allocation5]   ;;  %s521_s14 = smov [#allocation2]  }
   0x3   :  { %s35_s13 = sshll.u32 %s520_s12, 4  ;;  %s21_s15 = sshll.u32 %s521_s14, 4  ;;  %s36_s13 = int_to_ptr.vmem [resolvable:$true] %s35_s13  ;;  %s22_s15 = int_to_ptr.vmem [resolvable:$true] %s21_s15 }
   0x4   :  { %s426_s18 = scalar_lea.hbm %s758_s1, 1024 }
   0x5   :  { %p427_p0 = scmp.ne.s32.totalorder %s758_s1, %s426_s18  ;;  %p430_p1 = scmp.lt.u32.totalorder %s426_s18, %s758_s1 }
   0x7   :  { %p432_p2 = pnand %p430_p1, %p427_p0 }
   0x9   :  { %435 = shalt.err (!%p432_p2)
}
   0xa   :  { %s436_s23 = scalar_lea.vmem %s36_s13, 1024  ;;  %p441_p4 = scmp.lt.s32.totalorder %s36_s13, %s36_s13 }
   0xb   :  { %p437_p3 = scmp.ne.s32.totalorder %s36_s13, %s436_s23  ;;  %p442_p5 = scmp.lt.s32.totalorder %s436_s23, %s436_s23 }
   0xd   :  { %p443_p6 = por %p442_p5, %p441_p4 }
   0xf   :  { %p444_p7 = pnand %p443_p6, %p437_p3 }
  0x11   :  { %447 = shalt.err (!%p444_p7)
}
  0x12   :  { %38 = dma.hbm_to_vmem [thread:$0]  %s758_s1, 1024, %s36_s13, [#allocation6]  }
  0x13   :  { %s448_s28 = scalar_lea.hbm %s757_s0, 1024 }
  0x14   :  { %p449_p8 = scmp.ne.s32.totalorder %s757_s0, %s448_s28  ;;  %p452_p9 = scmp.lt.u32.totalorder %s448_s28, %s757_s0 }
  0x16   :  { %p454_p10 = pnand %p452_p9, %p449_p8 }
  0x18   :  { %457 = shalt.err (!%p454_p10)
}
  0x19   :  { %s458_s6 = scalar_lea.vmem %s22_s15, 1024  ;;  %p463_p12 = scmp.lt.s32.totalorder %s22_s15, %s22_s15 }
  0x1a   :  { %p459_p11 = scmp.ne.s32.totalorder %s22_s15, %s458_s6  ;;  %p464_p13 = scmp.lt.s32.totalorder %s458_s6, %s458_s6 }
  0x1c   :  { %p465_p0 = por %p464_p13, %p463_p12 }
  0x1e   :  { %p466_p1 = pnand %p465_p0, %p459_p11 }
  0x20   :  { %469 = shalt.err (!%p466_p1)
}
  0x21   :  { %24 = dma.hbm_to_vmem [thread:$0]  %s757_s0, 1024, %s22_s15, [#allocation3]  }
  0x22   :  { %s522_s8 = smov [#allocation7]   ;;  %s470_s12 = scalar_lea.hbm %s759_s2, 1024 }
  0x23   :  { %s49_s9 = sshll.u32 %s522_s8, 4  ;;  %p471_p2 = scmp.ne.s32.totalorder %s759_s2, %s470_s12  ;;  %s50_s9 = int_to_ptr.vmem [resolvable:$true] %s49_s9 }
  0x24   :  { %p474_p3 = scmp.lt.u32.totalorder %s470_s12, %s759_s2 }
  0x26   :  { %p476_p4 = pnand %p474_p3, %p471_p2 }
  0x28   :  { %479 = shalt.err (!%p476_p4)
}
  0x29   :  { %s480_s18 = scalar_lea.vmem %s50_s9, 1024  ;;  %p485_p6 = scmp.lt.s32.totalorder %s50_s9, %s50_s9 }
  0x2a   :  { %p481_p5 = scmp.ne.s32.totalorder %s50_s9, %s480_s18  ;;  %p486_p7 = scmp.lt.s32.totalorder %s480_s18, %s480_s18 }
  0x2c   :  { %p487_p8 = por %p486_p7, %p485_p6 }
  0x2e   :  { %p488_p9 = pnand %p487_p8, %p481_p5 }
  0x30   :  { %491 = shalt.err (!%p488_p9)
}
  0x31   :  { %52 = dma.hbm_to_vmem [thread:$0]  %s759_s2, 1024, %s50_s9, [#allocation6]  }
  0x32   :  { %514 = dma.done.wait [#allocation3], 1024  }
  0x33   :  { %515 = vsyncadd [#allocation3], 4294966272 }
  0x34   :  { %516 = dma.done.wait [#allocation6], 2048  }
  0x35   :  { %517 = vsyncadd [#allocation6], 4294965248  ;;  %v580_v0 = vld [vmem:[#allocation2] sm:$0xff]  ;;  %v583_v2 = vld [vmem:[#allocation2 + $0x8] sm:$0xff]  ;;  %s523_s2 = smov [#allocation8]  }
  0x36   :  { %v101_v1 = vand.u32 2147483647, %v580_v0  ;;  %v102_v3 = vand.u32 2147483647, %v583_v2  ;;  %v586_v4 = vld [vmem:[#allocation2 + $0x10] sm:$0xff]  ;;  %v589_v8 = vld [vmem:[#allocation2 + $0x18] sm:$0xff] }
  0x37   :  { %v103_v7 = vand.u32 2147483647, %v586_v4  ;;  %v104_v12 = vand.u32 2147483647, %v589_v8  ;;  %v592_v13 = vld [vmem:[#allocation2 + $0x20] sm:$0xff]  ;;  %v594_v16 = vld [vmem:[#allocation2 + $0x28] sm:$0xff] }
  0x38   :  { %v109_v5 = vsub.f32 0.0, %v101_v1  ;;  %v110_v6 = vsub.f32 0.0, %v102_v3  ;;  %v105_v17 = vand.u32 2147483647, %v592_v13  ;;  %v106_v20 = vand.u32 2147483647, %v594_v16 }
  0x39   :  { %v111_v11 = vsub.f32 0.0, %v103_v7  ;;  %v112_v15 = vsub.f32 0.0, %v104_v12  ;;  %v598_v21 = vld [vmem:[#allocation2 + $0x30] sm:$0xff]  ;;  %v600_v24 = vld [vmem:[#allocation2 + $0x38] sm:$0xff]  ;;  %v85_v26 = vld [vmem:[#allocation5] sm:$0xff]  ;;  %v205_v35 = vmax.f32 %v580_v0, 0.0 }
  0x3a   :  { %v117_v9 = vmul.f32 1.442695, %v109_v5  ;;  %v119_v10 = vmul.f32 1.442695, %v110_v6  ;;  %v113_v19 = vsub.f32 0.0, %v105_v17  ;;  %v114_v23 = vsub.f32 0.0, %v106_v20 }
  0x3b   :  { %v121_v14 = vmul.f32 1.442695, %v111_v11  ;;  %v123_v18 = vmul.f32 1.442695, %v112_v15  ;;  %v107_v25 = vand.u32 2147483647, %v598_v21  ;;  %v213_v36 = vmul.f32 %v85_v26, %v580_v0 }
  0x3c   :  { %378 = vpow2.f32 %v117_v9  ;;  %v125_v22 = vmul.f32 1.442695, %v113_v19  ;;  %v127_v27 = vmul.f32 1.442695, %v114_v23  ;;  %v108_v30 = vand.u32 2147483647, %v600_v24 }
  0x3d   :  { %380 = vpow2.f32 %v119_v10  ;;  %v115_v29 = vsub.f32 0.0, %v107_v25  ;;  %v86_v33 = vld [vmem:[#allocation5 + $0x8] sm:$0xff]  ;;  %v604_v34 = vld [vmem:[#allocation7] sm:$0xff]  ;;  %v206_v40 = vmax.f32 %v583_v2, 0.0  ;;  %v237_v46 = vmin.f32 %v580_v0, 0.0  ;;  %v626_v55 = vld [vmem:[#allocation5 + $0x10] sm:$0xff] }
  0x3e   :  { %382 = vpow2.f32 %v121_v14  ;;  %v116_v41 = vsub.f32 0.0, %v108_v30  ;;  %v611_v43 = vld [vmem:[#allocation7 + $0x8] sm:$0xff]  ;;  %v214_v44 = vmul.f32 %v86_v33, %v583_v2  ;;  %v285_v47 = vsub.f32 1.0, %v604_v34  ;;  %s363_s19 = sshll.u32 %s523_s2, 4  ;;  %s364_s19 = int_to_ptr.vmem [resolvable:$true] %s363_s19 }
  0x3f   :  { %384 = vpow2.f32 %v123_v18  ;;  %v129_v38 = vmul.f32 1.442695, %v115_v29  ;;  %v619_v50 = vsub.f32 %v205_v35, %v213_v36  ;;  %v622_v51 = vmul.f32 %v604_v34, %v85_v26  ;;  %s492_s20 = scalar_lea.vmem %s364_s19, 1024  ;;  %p497_p11 = scmp.lt.s32.totalorder %s364_s19, %s364_s19 }
  0x40   :  { %386 = vpow2.f32 %v125_v22  ;;  %v131_v52 = vmul.f32 1.442695, %v116_v41  ;;  %v238_v53 = vmin.f32 %v583_v2, 0.0  ;;  %v286_v54 = vsub.f32 1.0, %v611_v43  ;;  %p493_p10 = scmp.ne.s32.totalorder %s364_s19, %s492_s20  ;;  %p498_p12 = scmp.lt.s32.totalorder %s492_s20, %s492_s20 }
  0x41   :  { %388 = vpow2.f32 %v127_v27  ;;  %v630_v59 = vsub.f32 %v206_v40, %v214_v44  ;;  %v633_v60 = vmul.f32 %v611_v43, %v86_v33  ;;  %v207_v1 = vmax.f32 %v586_v4, 0.0 }
  0x42   :  { %v638_v2 = vmul.f32 %v626_v55, %v586_v4  ;;  %v239_v9 = vmin.f32 %v586_v4, 0.0  ;;  %v240_v10 = vmin.f32 %v589_v8, 0.0  ;;  %v241_v11 = vmin.f32 %v592_v13, 0.0  ;;  %p499_p13 = por %p498_p12, %p497_p11 }
  0x44   :  { %p500_p0 = pnand %p499_p13, %p493_p10 }
  0x46   :  { %v379_v28 = vpop.eup %378 }
  0x47   :  { %v381_v31 = vpop.eup %380  ;;  %v133_v32 = vadd.f32 1.0, %v379_v28  ;;  %v136_v42 = vmul.f32 -0.5, %v379_v28  ;;  %v139_v62 = vand.u32 2147483647, %v379_v28 }
  0x48   :  { %v142_v37 = vadd.f32 1.0, %v381_v31  ;;  %v608_v39 = vpop.eup %382  ;;  %v145_v48 = vmul.f32 -0.5, %v381_v31  ;;  %v148_v0 = vand.u32 2147483647, %v381_v31 }
  0x49   :  { %390 = vlog2.f32 %v133_v32  ;;  %v151_v45 = vadd.f32 1.0, %v608_v39  ;;  %v617_v49 = vpop.eup %384  ;;  %v154_v56 = vmul.f32 -0.5, %v608_v39  ;;  %v137_v58 = vadd.f32 1.0, %v136_v42 }
  0x4a   :  { %392 = vlog2.f32 %v142_v37  ;;  %v160_v57 = vadd.f32 1.0, %v617_v49  ;;  %v387_v61 = vpop.eup %386  ;;  %v146_v63 = vadd.f32 1.0, %v145_v48  ;;  %v163_v3 = vmul.f32 -0.5, %v617_v49 }
  0x4b   :  { %394 = vpow2.f32 %v129_v38  ;;  %v169_v5 = vadd.f32 1.0, %v387_v61  ;;  %v641_v6 = vpop.eup %388  ;;  %v155_v7 = vadd.f32 1.0, %v154_v56  ;;  %v138_v12 = vmul.f32 %v379_v28, %v137_v58 }
  0x4c   :  { %396 = vlog2.f32 %v151_v45  ;;  %v157_v14 = vand.u32 2147483647, %v608_v39  ;;  %v178_v15 = vadd.f32 1.0, %v641_v6  ;;  %vm140_vm0 = vcmp.lt.f32.partialorder %v139_v62, 0.0004427343 }
  0x4d   :  { %398 = vpow2.f32 %v131_v52  ;;  %v147_v18 = vmul.f32 %v381_v31, %v146_v63  ;;  %vm648_vm1 = vcmp.lt.f32.partialorder %v148_v0, 0.0004427343  ;;  %v172_v20 = vmul.f32 -0.5, %v387_v61 }
  0x4e   :  { %400 = vlog2.f32 %v160_v57  ;;  %v164_v25 = vadd.f32 1.0, %v163_v3  ;;  %v181_v26 = vmul.f32 -0.5, %v641_v6  ;;  %v156_v29 = vmul.f32 %v608_v39, %v155_v7 }
  0x4f   :  { %402 = vlog2.f32 %v169_v5  ;;  %v166_v30 = vand.u32 2147483647, %v617_v49  ;;  %v242_v31 = vmin.f32 %v594_v16, 0.0  ;;  %vm158_vm2 = vcmp.lt.f32.partialorder %v157_v14, 0.0004427343 }
  0x50   :  { %404 = vlog2.f32 %v178_v15  ;;  %v175_v35 = vand.u32 2147483647, %v387_v61  ;;  %v173_v41 = vadd.f32 1.0, %v172_v20  ;;  %v165_v44 = vmul.f32 %v617_v49, %v164_v25 }
  0x51   :  { %v182_v45 = vadd.f32 1.0, %v181_v26  ;;  %vm167_vm3 = vcmp.lt.f32.partialorder %v166_v30, 0.0004427343  ;;  %v184_v63 = vand.u32 2147483647, %v641_v6 }
  0x52   :  { %v174_v3 = vmul.f32 %v387_v61, %v173_v41  ;;  %vm675_vm4 = vcmp.lt.f32.partialorder %v175_v35, 0.0004427343 }
  0x53   :  { %v391_v17 = vpop.eup %390  ;;  %v183_v15 = vmul.f32 %v641_v6, %v182_v45  ;;  %vm185_vm5 = vcmp.lt.f32.partialorder %v184_v63, 0.0004427343  ;;  %v689_v6 = vld [vmem:[#allocation7 + $0x10] sm:$0xff] }
  0x54   :  { %v393_v22 = vpop.eup %392  ;;  %v135_v23 = vmul.f32 0.6931472, %v391_v17 }
  0x55   :  { %v653_v27 = vpop.eup %394  ;;  %v144_v28 = vmul.f32 0.6931472, %v393_v22 }
  0x56   :  { %v397_v32 = vpop.eup %396  ;;  %v658_v33 = vsel %vm140_vm0, %v138_v12, %v135_v23  ;;  %v187_v36 = vadd.f32 1.0, %v653_v27  ;;  %v193_v22 = vand.u32 2147483647, %v653_v27 }
  0x57   :  { %v245_v37 = vsub.f32 %v237_v46, %v658_v33  ;;  %v664_v38 = vsel %vm648_vm1, %v147_v18, %v144_v28  ;;  %v153_v40 = vmul.f32 0.6931472, %v397_v32  ;;  %v666_v39 = vpop.eup %398  ;;  %v190_v46 = vmul.f32 -0.5, %v653_v27 }
  0x58   :  { %v246_v42 = vsub.f32 %v238_v53, %v664_v38  ;;  %406 = vlog2.f32 %v187_v36  ;;  %v401_v48 = vpop.eup %400  ;;  %v196_v49 = vadd.f32 1.0, %v666_v39  ;;  %vm194_vm6 = vcmp.lt.f32.partialorder %v193_v22, 0.0004427343 }
  0x59   :  { %v253_v52 = vmul.f32 2.0, %v245_v37  ;;  %v670_v56 = vsel %vm158_vm2, %v156_v29, %v153_v40  ;;  %v162_v62 = vmul.f32 0.6931472, %v401_v48  ;;  %v403_v5 = vpop.eup %402  ;;  %v191_v19 = vadd.f32 1.0, %v190_v46  ;;  %v700_v40 = vld [vmem:[#allocation7 + $0x18] sm:$0xff]  ;;  %v89_v48 = vld [vmem:[#allocation5 + $0x20] sm:$0xff] }
  0x5a   :  { %v254_v57 = vmul.f32 2.0, %v246_v42  ;;  %v247_v58 = vsub.f32 %v239_v9, %v670_v56  ;;  %v88_v9 = vld [vmem:[#allocation5 + $0x18] sm:$0xff]  ;;  %v171_v18 = vmul.f32 0.6931472, %v403_v5  ;;  %v405_v61 = vpop.eup %404  ;;  %v199_v29 = vmul.f32 -0.5, %v666_v39 }
  0x5b   :  { %v261_v0 = vmul.f32 1.442695, %v253_v52  ;;  %v680_v14 = vsel %vm167_vm3, %v165_v44, %v162_v62  ;;  %v180_v26 = vmul.f32 0.6931472, %v405_v61  ;;  %v216_v30 = vmul.f32 %v88_v9, %v589_v8  ;;  %v710_v52 = vld [vmem:[#allocation7 + $0x20] sm:$0xff] }
  0x5c   :  { %v263_v7 = vmul.f32 1.442695, %v254_v57  ;;  %v255_v12 = vmul.f32 2.0, %v247_v58  ;;  %v248_v17 = vsub.f32 %v240_v10, %v680_v14  ;;  %v687_v25 = vsel %vm675_vm4, %v174_v3, %v171_v18 }
  0x5d   :  { %408 = vpow2.f32 %v261_v0  ;;  %v208_v10 = vmax.f32 %v589_v8, 0.0  ;;  %v249_v28 = vsub.f32 %v241_v11, %v687_v25  ;;  %v697_v35 = vsel %vm185_vm5, %v183_v15, %v180_v26 }
  0x5e   :  { %410 = vpow2.f32 %v263_v7  ;;  %v265_v20 = vmul.f32 1.442695, %v255_v12  ;;  %v256_v23 = vmul.f32 2.0, %v248_v17  ;;  %v192_v36 = vmul.f32 %v653_v27, %v191_v19 }
  0x5f   :  { %412 = vlog2.f32 %v196_v49  ;;  %v257_v41 = vmul.f32 2.0, %v249_v28  ;;  %v250_v42 = vsub.f32 %v242_v31, %v697_v35  ;;  %v243_v44 = vmin.f32 %v598_v21, 0.0 }
  0x60   :  { %414 = vpow2.f32 %v265_v20  ;;  %v267_v32 = vmul.f32 1.442695, %v256_v23  ;;  %v223_v11 = vsub.f32 %v207_v1, %v638_v2  ;;  %v287_v8 = vsub.f32 1.0, %v689_v6  ;;  %v90_v2 = vld [vmem:[#allocation5 + $0x28] sm:$0xff] }
  0x61   :  { %v303_v27 = vmul.f32 %v689_v6, %v626_v55  ;;  %v269_v46 = vmul.f32 1.442695, %v257_v41  ;;  %v258_v57 = vmul.f32 2.0, %v250_v42  ;;  %v200_v31 = vadd.f32 1.0, %v199_v29  ;;  %v98_v29 = vld [vmem:[#allocation7 + $0x28] sm:$0xff] }
  0x62   :  { %v407_v37 = vpop.eup %406  ;;  %416 = vpow2.f32 %v267_v32  ;;  %v288_v58 = vsub.f32 1.0, %v700_v40  ;;  %v304_v62 = vmul.f32 %v700_v40, %v88_v9  ;;  %v202_v4 = vand.u32 2147483647, %v666_v39 }
  0x63   :  { %v189_v45 = vmul.f32 0.6931472, %v407_v37  ;;  %v224_v1 = vsub.f32 %v208_v10, %v216_v30  ;;  %418 = vpow2.f32 %v269_v46  ;;  %v271_v0 = vmul.f32 1.442695, %v258_v57  ;;  %v91_v37 = vld [vmem:[#allocation5 + $0x30] sm:$0xff] }
  0x64   :  { %v209_v53 = vmax.f32 %v592_v13, 0.0  ;;  %v217_v49 = vmul.f32 %v89_v48, %v592_v13  ;;  %v289_v5 = vsub.f32 1.0, %v710_v52  ;;  %v210_v7 = vmax.f32 %v594_v16, 0.0 }
  0x65   :  { %v714_v63 = vsel %vm194_vm6, %v192_v36, %v189_v45  ;;  %420 = vpow2.f32 %v271_v0  ;;  %v201_v17 = vmul.f32 %v666_v39, %v200_v31  ;;  %v218_v61 = vmul.f32 %v90_v2, %v594_v16 }
  0x66   :  { %v251_v55 = vsub.f32 %v243_v44, %v714_v63  ;;  %vm203_vm7 = vcmp.lt.f32.partialorder %v202_v4, 0.0004427343  ;;  %v244_v20 = vmin.f32 %v600_v24, 0.0  ;;  %v229_v13 = vadd.f32 %v619_v50, %v658_v33 }
  0x67   :  { %v409_v3 = vpop.eup %408  ;;  %v230_v10 = vadd.f32 %v630_v59, %v664_v38  ;;  %v305_v16 = vmul.f32 %v710_v52, %v89_v48  ;;  %v225_v32 = vsub.f32 %v209_v53, %v217_v49  ;;  %v290_v40 = vsub.f32 1.0, %v98_v29  ;;  %v92_v49 = vld [vmem:[#allocation5 + $0x38] sm:$0xff] }
  0x68   :  { %v411_v12 = vpop.eup %410  ;;  %v277_v15 = vmul.f32 0.75, %v409_v3  ;;  %v259_v9 = vmul.f32 2.0, %v251_v55  ;;  %v211_v44 = vmax.f32 %v598_v21, 0.0  ;;  %v232_v48 = vadd.f32 %v224_v1, %v680_v14 }
  0x69   :  { %v413_v18 = vpop.eup %412  ;;  %v278_v19 = vmul.f32 0.75, %v411_v12  ;;  %v233_v4 = vadd.f32 %v225_v32, %v687_v25  ;;  %v306_v0 = vmul.f32 %v98_v29, %v90_v2  ;;  %v212_v25 = vmax.f32 %v600_v24, 0.0 }
  0x6a   :  { %v415_v22 = vpop.eup %414  ;;  %v293_v23 = vmul.f32 %v285_v47, %v277_v15  ;;  %v273_v26 = vmul.f32 1.442695, %v259_v9  ;;  %v198_v6 = vmul.f32 0.6931472, %v413_v18  ;;  %v231_v47 = vadd.f32 %v223_v11, %v670_v56  ;;  %v99_v11 = vld [vmem:[#allocation7 + $0x30] sm:$0xff] }
  0x6b   :  { %v294_v39 = vmul.f32 %v286_v54, %v278_v19  ;;  %v279_v28 = vmul.f32 0.75, %v415_v22  ;;  %v226_v54 = vsub.f32 %v210_v7, %v218_v61  ;;  %v291_v53 = vsub.f32 1.0, %v99_v11  ;;  %v100_v19 = vld [vmem:[#allocation7 + $0x38] sm:$0xff] }
  0x6c   :  { %v309_v30 = vadd.f32 %v622_v51, %v293_v23  ;;  %422 = vpow2.f32 %v273_v26  ;;  %v204_v50 = vsel %vm203_vm7, %v201_v17, %v198_v6  ;;  %v417_v33 = vpop.eup %416  ;;  %v307_v9 = vmul.f32 %v99_v11, %v91_v37 }
  0x6d   :  { %v310_v34 = vadd.f32 %v633_v60, %v294_v39  ;;  %v295_v36 = vmul.f32 %v287_v8, %v279_v28  ;;  %v252_v59 = vsub.f32 %v244_v20, %v204_v50  ;;  %v280_v43 = vmul.f32 0.75, %v417_v33  ;;  %v419_v45 = vpop.eup %418 }
  0x6e   :  { %v317_v38 = vmul.f32 %v309_v30, %v229_v13  ;;  %v219_v60 = vmul.f32 %v91_v37, %v598_v21  ;;  %v281_v56 = vmul.f32 0.75, %v419_v45  ;;  %v234_v21 = vadd.f32 %v226_v54, %v697_v35 }
  0x6f   :  { %v318_v41 = vmul.f32 %v310_v34, %v230_v10  ;;  %v311_v42 = vadd.f32 %v303_v27, %v295_v36  ;;  %v260_v51 = vmul.f32 2.0, %v252_v59  ;;  %v296_v52 = vmul.f32 %v288_v58, %v280_v43  ;;  %v421_v57 = vpop.eup %420 }
  0x70   :  { %349 = vst [vmem:[#allocation8] sm:$0xff] %v317_v38  ;;  %v297_v27 = vmul.f32 %v289_v5, %v281_v56  ;;  %v282_v55 = vmul.f32 0.75, %v421_v57  ;;  %v227_v1 = vsub.f32 %v211_v44, %v219_v60  ;;  %v220_v2 = vmul.f32 %v92_v49, %v600_v24 }
  0x71   :  { %v319_v46 = vmul.f32 %v311_v42, %v231_v47  ;;  %v275_v8 = vmul.f32 1.442695, %v260_v51  ;;  %v312_v31 = vadd.f32 %v304_v62, %v296_v52  ;;  %350 = vst [vmem:[#allocation8 + $0x8] sm:$0xff] %v318_v41  ;;  %v292_v20 = vsub.f32 1.0, %v100_v19 }
  0x72   :  { %v313_v14 = vadd.f32 %v305_v16, %v297_v27  ;;  %v298_v58 = vmul.f32 %v290_v40, %v282_v55  ;;  %v235_v17 = vadd.f32 %v227_v1, %v714_v63  ;;  %v228_v61 = vsub.f32 %v212_v25, %v220_v2 }
  0x73   :  { %424 = vpow2.f32 %v275_v8  ;;  %v320_v3 = vmul.f32 %v312_v31, %v232_v48  ;;  %351 = vst [vmem:[#allocation8 + $0x10] sm:$0xff] %v319_v46  ;;  %v308_v26 = vmul.f32 %v100_v19, %v92_v49 }
  0x74   :  { %v321_v12 = vmul.f32 %v313_v14, %v233_v4  ;;  %v314_v15 = vadd.f32 %v306_v0, %v298_v58  ;;  %v236_v6 = vadd.f32 %v228_v61, %v204_v50 }
  0x75   :  { %352 = vst [vmem:[#allocation8 + $0x18] sm:$0xff] %v320_v3 }
  0x76   :  { %v423_v7 = vpop.eup %422  ;;  %v322_v5 = vmul.f32 %v314_v15, %v234_v21  ;;  %353 = vst [vmem:[#allocation8 + $0x20] sm:$0xff] %v321_v12 }
  0x77   :  { %v283_v62 = vmul.f32 0.75, %v423_v7 }
  0x78   :  { %354 = vst [vmem:[#allocation8 + $0x28] sm:$0xff] %v322_v5 }
  0x79   :  { %v299_v18 = vmul.f32 %v291_v53, %v283_v62 }
  0x7b   :  { %v315_v35 = vadd.f32 %v307_v9, %v299_v18 }
  0x7d   :  { %v425_v22 = vpop.eup %424  ;;  %v323_v13 = vmul.f32 %v315_v35, %v235_v17 }
  0x7e   :  { %v284_v23 = vmul.f32 0.75, %v425_v22 }
  0x7f   :  { %355 = vst [vmem:[#allocation8 + $0x30] sm:$0xff] %v323_v13 }
  0x80   :  { %v300_v10 = vmul.f32 %v292_v20, %v284_v23 }
  0x82   :  { %v316_v39 = vadd.f32 %v308_v26, %v300_v10 }
  0x84   :  { %v324_v24 = vmul.f32 %v316_v39, %v236_v6 }
  0x86   :  { %356 = vst [vmem:[#allocation8 + $0x38] sm:$0xff] %v324_v24 }
  0x87   :  { %503 = shalt.err (!%p500_p0)
}
  0x88   :  { %s504_s23 = scalar_lea.hbm %s760_s3, 1024 }
  0x89   :  { %p505_p1 = scmp.ne.s32.totalorder %s760_s3, %s504_s23  ;;  %p508_p2 = scmp.lt.u32.totalorder %s504_s23, %s760_s3 }
  0x8b   :  { %p510_p3 = pnand %p508_p2, %p505_p1 }
  0x8d   :  { %513 = shalt.err (!%p510_p3)
}
  0x8e   :  { %366 = dma.vmem_to_hbm [thread:$0]  %s364_s19, 1024, %s760_s3, [#allocation4]  }
  0x8f   :  { %518 = dma.done.wait [#allocation4], 1024  }
  0x90   :  { %519 = vsyncadd [#allocation4], 4294966272 }
  0x91   :  { %370 = vsyncpa [#allocation3], 1 }
  0x92   :  { %371 = vsyncpa [#allocation6], 1 }
  0x93   :  { %372 = vsyncpa [#allocation4], 1 }

</bundles_post_ra>
